<compile_context>
chip_gen: v7x
topology: tpu7x:2x2x1
jax: 0.10.0
libtpu: 0.0.40
codegen_flags: <defaults>
</compile_context>

<pallas_src>
import functools

import jax
import jax.numpy as jnp
from jax.experimental import pallas as pl
from jax.experimental.pallas import tpu as pltpu

VMEM = pltpu.MemorySpace.VMEM

HID = 6          # self.hid
RAISED = 8       # self.raised_dimension
HID_PAD = 8      # hid padded to a sublane multiple
K_CHEB = 5       # ChebConv K
CONCAT = 64      # self.concate_layer


def _vmem_specs(n):
    return [pl.BlockSpec(memory_space=VMEM) for _ in range(n)]


# ---------------------------------------------------------------------------
# Single fused kernel:
#   pre-Linear(1,8)+ReLU -> ChebConv+ReLU -> ChebConv+ReLU
#   -> linear1+ReLU -> linear2+ReLU -> classifier -> log_softmax
# Activations live in the transposed, batched layout (B, features, N nodes):
# nodes on lanes, features on sublanes, batch as the matmul batch dim.
# ---------------------------------------------------------------------------
def _gcn_kernel(x_ref, basis_ref, pw_ref, pb_ref, w1s_ref, b1_ref,
                w2s_ref, b2_ref, w1l_ref, b1l_ref, w2l_ref, b2l_ref,
                wc_ref, bc_ref, o_ref, *, K, FP, HIDF, N):
    B = x_ref.shape[0]
    basis = basis_ref[...]                                    # (B, N, (K-1)*N) bf16

    # pre_conv_linear_gene (Linear(1, 8)) + ReLU, transposed / folded:
    #   h[b, f, n] = relu(w[f] * x[b, n] + b[f])
    h = jnp.maximum(pw_ref[...][None] * x_ref[...] + pb_ref[...][None], 0.0)  # (B, FP, N) f32

    def cheb_relu(h, ws_ref, b_ref):
        # One wide MXU matmul against the precomputed Chebyshev basis gives all
        # T_1..T_{K-1} terms at once (no serial recurrence inside the kernel).
        wide = jnp.einsum('bfn,bnm->bfm', h.astype(jnp.bfloat16), basis,
                          preferred_element_type=jnp.float32)  # (B, FP, (K-1)*N)
        stack = jnp.concatenate(
            [h] + [wide[:, :, k * N:(k + 1) * N] for k in range(K - 1)],
            axis=1).astype(jnp.bfloat16)                       # (B, K*FP, N)
        wb = jnp.broadcast_to(ws_ref[...][None], (B,) + ws_ref.shape)
        out = jnp.einsum('boj,bjn->bon', wb, stack,
                         preferred_element_type=jnp.float32) + b_ref[...][None]
        return jnp.maximum(out, 0.0)                           # (B, FP, N) f32

    h = cheb_relu(h, w1s_ref, b1_ref)
    h = cheb_relu(h, w2s_ref, b2_ref)

    # graph_max_pool with poolsize <= 1 is identity.
    # linear1: the PyTorch (node, feature) flatten permutation is folded into
    # lin1_w's layout (HIDF, N, L1out) at pack time, so the contraction becomes
    # per-feature accumulated dots over the node axis (no in-kernel relayout).
    y = b1l_ref[...]                                           # (1, L1out)
    for f in range(HIDF):
        y = y + jnp.dot(h[:, f, :].astype(jnp.bfloat16), w1l_ref[f],
                        preferred_element_type=jnp.float32)
    y = jnp.maximum(y, 0.0)                                    # (B, L1out)

    y = jnp.dot(y.astype(jnp.bfloat16), w2l_ref[...],
                preferred_element_type=jnp.float32) + b2l_ref[...]
    y = jnp.maximum(y, 0.0)                                    # (B, CONCAT)

    # TODO(synk): F.dropout skipped (eval mode, training=False -> identity).
    z = jnp.dot(y.astype(jnp.bfloat16), wc_ref[...],
                preferred_element_type=jnp.float32) + bc_ref[...]
    z = z - jnp.max(z, axis=-1, keepdims=True)
    o_ref[...] = z - jnp.log(jnp.sum(jnp.exp(z), axis=-1, keepdims=True))


def gcn_fused(x_t, basis, q, *, K=K_CHEB, FP=HID_PAD, hid=HID):
    # TODO(synk): at realistic node counts, tile the basis over lane blocks and
    # lin1 over (reduction, output-column) blocks with a grid (+ 'parallel'
    # batch axis on v7x for both TensorCores) and raise vmem_limit_bytes; at
    # demo scale everything fits in VMEM in one grid-less invocation.
    # TODO(synk): pad N up to a multiple of 128 for fully lane-dense vregs when
    # N is not tile-friendly (demo N=32, basis lanes already 128).
    B, _, N = x_t.shape
    C = q['cls_b'].shape[1]
    kern = functools.partial(_gcn_kernel, K=K, FP=FP, HIDF=hid, N=N)
    return pl.pallas_call(
        kern,
        out_shape=jax.ShapeDtypeStruct((B, C), jnp.float32),
        in_specs=_vmem_specs(14),
        out_specs=pl.BlockSpec(memory_space=VMEM),
    )(x_t, basis, q['pre_w'], q['pre_b'], q['conv1_w'], q['conv1_b'],
      q['conv2_w'], q['conv2_b'], q['lin1_w'], q['lin1_b'],
      q['lin2_w'], q['lin2_b'], q['cls_w'], q['cls_b'])


# ---------------------------------------------------------------------------
# Graph preprocessing (hoisted out of the per-step forward; static graph).
# ---------------------------------------------------------------------------
def prepare_graph_blocks(edge_index, edge_weight, batches, num_node, K=K_CHEB):
    """Per-batch block-diagonal L_hat blocks -> Chebyshev basis [T1..T_{K-1}](L_hat)^T.

    PyG ChebConv normalization ('sym', default lambda_max=2.0):
      L_hat = (2/lambda_max)(I - D^-1/2 A D^-1/2) - I = -D^-1/2 A D^-1/2
    """
    # TODO(synk): cross-batch edges (never produced by PyG batching) are not
    # supported by this block-diagonal fast path.
    row, col = edge_index
    b = row // num_node
    A = jnp.zeros((batches, num_node, num_node), jnp.float32)
    A = A.at[b, row % num_node, col % num_node].add(edge_weight)
    deg = A.sum(axis=2)
    dinv = jnp.where(deg > 0, 1.0 / jnp.sqrt(deg), 0.0)
    lhat = -(dinv[:, :, None] * A * dinv[:, None, :])          # (B, N, N)
    # Kernel right-multiplies (transposed layout), so use L_hat^T blocks.
    lhatT = jnp.swapaxes(lhat, 1, 2)
    eye = jnp.eye(num_node, dtype=jnp.float32)[None]
    cheb = [lhatT, 2.0 * (lhatT @ lhatT) - eye]
    while len(cheb) < K - 1:
        cheb.append(2.0 * (cheb[-1] @ lhatT) - cheb[-2])
    basis = jnp.concatenate(cheb[:K - 1], axis=-1)             # (B, N, (K-1)*N)
    # bf16 feeds the fast MXU path; accumulation stays f32 inside the kernel.
    return basis.astype(jnp.bfloat16)


# ---------------------------------------------------------------------------
# Parameter setup / packing, orchestration
# ---------------------------------------------------------------------------
def init_params(key, num_gene, num_mirna, num_classes,
                hid=HID, raised_dimension=RAISED, concate_layer=CONCAT, K=K_CHEB):
    num_node = num_gene + num_mirna
    linear_input = num_node * hid
    keys = jax.random.split(key, 10)

    def uni(k, shape, fan_in):
        bound = 1.0 / (fan_in ** 0.5)
        return jax.random.uniform(k, shape, jnp.float32, -bound, bound)

    p = {}
    p['pre_w'] = uni(keys[0], (1, raised_dimension), 1)
    p['pre_b'] = uni(keys[1], (raised_dimension,), 1)
    p['conv1_w'] = uni(keys[2], (K, raised_dimension, hid), raised_dimension * K)
    p['conv1_b'] = jnp.zeros((hid,), jnp.float32)
    p['conv2_w'] = uni(keys[3], (K, hid, hid), hid * K)
    p['conv2_b'] = jnp.zeros((hid,), jnp.float32)
    p['lin1_w'] = uni(keys[4], (linear_input, linear_input // 4), linear_input)
    p['lin1_b'] = uni(keys[5], (linear_input // 4,), linear_input)
    p['lin2_w'] = uni(keys[6], (linear_input // 4, concate_layer), linear_input // 4)
    p['lin2_b'] = uni(keys[7], (concate_layer,), linear_input // 4)
    p['cls_w'] = uni(keys[8], (concate_layer, num_classes), concate_layer)
    p['cls_b'] = uni(keys[9], (num_classes,), concate_layer)
    return p


def pack_params(p, hid=HID, fp=HID_PAD, K=K_CHEB):
    """Rearrange PyTorch-layout params into the transposed/stacked/padded/bf16 kernel layout."""
    assert p['pre_w'].shape == (1, fp)

    def stack_t(w, fin, fout):
        # (K, fin, fout) -> pad to (K, fp, fp) -> (fp, K*fp) with [o, k*fp+f] = w[k, f, o]
        wp = jnp.zeros((K, fp, fp), jnp.float32).at[:, :fin, :fout].set(w)
        return jnp.transpose(wp, (2, 0, 1)).reshape(fp, K * fp).astype(jnp.bfloat16)

    def pad_col(b, n):
        return jnp.zeros((fp, 1), jnp.float32).at[:n, 0].set(b)

    # Fold the PyTorch (node, feature) flatten permutation into lin1's rows:
    #   lin1_w_split[f, n, :] = lin1_w[n*hid + f, :]
    w1_split = jnp.stack([p['lin1_w'][f::hid] for f in range(hid)],
                         axis=0).astype(jnp.bfloat16)          # (hid, N, L1out)

    return {
        'pre_w': p['pre_w'].reshape(fp, 1),
        'pre_b': p['pre_b'].reshape(fp, 1),
        'conv1_w': stack_t(p['conv1_w'], fin=fp, fout=hid),
        'conv1_b': pad_col(p['conv1_b'], hid),
        'conv2_w': stack_t(p['conv2_w'], fin=hid, fout=hid),
        'conv2_b': pad_col(p['conv2_b'], hid),
        'lin1_w': w1_split,
        'lin1_b': p['lin1_b'].reshape(1, -1),
        'lin2_w': p['lin2_w'].astype(jnp.bfloat16),
        'lin2_b': p['lin2_b'].reshape(1, -1),
        'cls_w': p['cls_w'].astype(jnp.bfloat16),
        'cls_b': p['cls_b'].reshape(1, -1),
    }


def gcn_forward(packed, basis, x):
    batches, num_node, feat = x.shape
    assert feat == 1  # omic_mode < 3 -> num_features = 1
    # (B, N, 1) -> (B, 1, N): order-preserving, free metadata reshape.
    x_t = x.reshape(batches, 1, num_node)
    return gcn_fused(x_t, basis, packed)


if __name__ == "__main__":
    key = jax.random.PRNGKey(0)
    B, num_gene, num_mirna, num_classes = 2, 32, 0, 4
    N = num_gene + num_mirna

    k_x, k_w, k_p = jax.random.split(key, 3)
    x = jax.random.normal(k_x, (B, N, 1), jnp.float32)

    # batched ring graph over B*N nodes (block-diagonal, both directions)
    src, dst = [], []
    for b in range(B):
        base = b * N
        for i in range(N):
            j = (i + 1) % N
            src += [base + i, base + j]
            dst += [base + j, base + i]
    edge_index = jnp.array([src, dst], dtype=jnp.int32)
    edge_weight = jax.random.uniform(k_w, (edge_index.shape[1],), jnp.float32, 0.5, 1.5)

    params = init_params(k_p, num_gene, num_mirna, num_classes)
    packed = pack_params(params)

    # Graph preprocessing hoisted out of the per-step jitted forward (static graph).
    basis = prepare_graph_blocks(edge_index, edge_weight, B, N)
    basis = jax.block_until_ready(basis)

    fwd = jax.jit(gcn_forward)
    out = fwd(packed, basis, x)
    jax.block_until_ready(out)
    assert out.shape == (B, num_classes)
    assert bool(jnp.all(jnp.isfinite(out)))
    print("KERNEL_OK")
</pallas_src>

<mosaic_0001>
module attributes {stable_mosaic.version = 11 : i64} {
  func.func @_gcn_kernel(%arg0: memref<2x1x32xf32, #tpu.memory_space<vmem>>, %arg1: memref<2x32x128xbf16, #tpu.memory_space<vmem>>, %arg2: memref<8x1xf32, #tpu.memory_space<vmem>>, %arg3: memref<8x1xf32, #tpu.memory_space<vmem>>, %arg4: memref<8x40xbf16, #tpu.memory_space<vmem>>, %arg5: memref<8x1xf32, #tpu.memory_space<vmem>>, %arg6: memref<8x40xbf16, #tpu.memory_space<vmem>>, %arg7: memref<8x1xf32, #tpu.memory_space<vmem>>, %arg8: memref<6x32x48xbf16, #tpu.memory_space<vmem>>, %arg9: memref<1x48xf32, #tpu.memory_space<vmem>>, %arg10: memref<48x64xbf16, #tpu.memory_space<vmem>>, %arg11: memref<1x64xf32, #tpu.memory_space<vmem>>, %arg12: memref<64x4xbf16, #tpu.memory_space<vmem>>, %arg13: memref<1x4xf32, #tpu.memory_space<vmem>>, %arg14: memref<2x4xf32, #tpu.memory_space<vmem>>) attributes {dimension_semantics = [], scalar_prefetch = 0 : i64, scratch_operands = 0 : i64, tpu.core_type = #tpu.core_type<tc>} {
    %c0 = arith.constant 0 : index
    %c0_0 = arith.constant 0 : index
    %c0_1 = arith.constant 0 : index
    %0 = vector.load %arg1[%c0, %c0_0, %c0_1] : memref<2x32x128xbf16, #tpu.memory_space<vmem>>, vector<2x32x128xbf16>
    %c0_2 = arith.constant 0 : index
    %c0_3 = arith.constant 0 : index
    %1 = vector.load %arg2[%c0_2, %c0_3] : memref<8x1xf32, #tpu.memory_space<vmem>>, vector<8x1xf32>
    %2 = vector.shape_cast %1 : vector<8x1xf32> to vector<1x8x1xf32>
    %c0_4 = arith.constant 0 : index
    %c0_5 = arith.constant 0 : index
    %c0_6 = arith.constant 0 : index
    %3 = vector.load %arg0[%c0_4, %c0_5, %c0_6] : memref<2x1x32xf32, #tpu.memory_space<vmem>>, vector<2x1x32xf32>
    %4 = vector.broadcast %2 : vector<1x8x1xf32> to vector<2x8x32xf32>
    %5 = vector.broadcast %3 : vector<2x1x32xf32> to vector<2x8x32xf32>
    %6 = arith.mulf %4, %5 : vector<2x8x32xf32>
    %c0_7 = arith.constant 0 : index
    %c0_8 = arith.constant 0 : index
    %7 = vector.load %arg3[%c0_7, %c0_8] : memref<8x1xf32, #tpu.memory_space<vmem>>, vector<8x1xf32>
    %8 = vector.shape_cast %7 : vector<8x1xf32> to vector<1x8x1xf32>
    %9 = vector.broadcast %8 : vector<1x8x1xf32> to vector<2x8x32xf32>
    %10 = arith.addf %6, %9 : vector<2x8x32xf32>
    %cst = arith.constant 0.000000e+00 : f32
    %11 = vector.broadcast %cst : f32 to vector<2x8x32xf32>
    %12 = arith.maximumf %10, %11 : vector<2x8x32xf32>
    %13 = arith.truncf %12 : vector<2x8x32xf32> to vector<2x8x32xbf16>
    "tpu.trace_start"() <{level = 10 : i32, message = "bfn,bnm->bfm"}> : () -> ()
    %cst_9 = arith.constant dense<0.000000e+00> : vector<2x8x128xf32>
    %14 = tpu.matmul %13, %0, %cst_9 {dimension_numbers = #tpu.dot_dimension_numbers<[2], [1], [1], [2], [0, 0, 0, 1, 1, 2], [0], [0]>} : vector<2x8x32xbf16>, vector<2x32x128xbf16>, vector<2x8x128xf32> -> vector<2x8x128xf32>
    "tpu.trace_stop"() : () -> ()
    %15 = vector.extract_strided_slice %14 {offsets = [0, 0, 0], sizes = [2, 8, 32], strides = [1, 1, 1]} : vector<2x8x128xf32> to vector<2x8x32xf32>
    %16 = vector.extract_strided_slice %14 {offsets = [0, 0, 32], sizes = [2, 8, 32], strides = [1, 1, 1]} : vector<2x8x128xf32> to vector<2x8x32xf32>
    %17 = vector.extract_strided_slice %14 {offsets = [0, 0, 64], sizes = [2, 8, 32], strides = [1, 1, 1]} : vector<2x8x128xf32> to vector<2x8x32xf32>
    %18 = vector.extract_strided_slice %14 {offsets = [0, 0, 96], sizes = [2, 8, 32], strides = [1, 1, 1]} : vector<2x8x128xf32> to vector<2x8x32xf32>
    %19 = tpu.concatenate %12, %15, %16, %17, %18 in 1 : vector<2x8x32xf32>, vector<2x8x32xf32>, vector<2x8x32xf32>, vector<2x8x32xf32>, vector<2x8x32xf32> -> vector<2x40x32xf32>
    %20 = arith.truncf %19 : vector<2x40x32xf32> to vector<2x40x32xbf16>
    %c0_10 = arith.constant 0 : index
    %c0_11 = arith.constant 0 : index
    %21 = vector.load %arg4[%c0_10, %c0_11] : memref<8x40xbf16, #tpu.memory_space<vmem>>, vector<8x40xbf16>
    %22 = vector.shape_cast %21 : vector<8x40xbf16> to vector<1x8x40xbf16>
    %23 = vector.shape_cast %22 : vector<1x8x40xbf16> to vector<1x8x40xbf16>
    %24 = vector.broadcast %23 : vector<1x8x40xbf16> to vector<2x8x40xbf16>
    "tpu.trace_start"() <{level = 10 : i32, message = "boj,bjn->bon"}> : () -> ()
    %cst_12 = arith.constant dense<0.000000e+00> : vector<2x8x32xf32>
    %25 = tpu.matmul %24, %20, %cst_12 {dimension_numbers = #tpu.dot_dimension_numbers<[2], [1], [1], [2], [0, 0, 0, 1, 1, 2], [0], [0]>} : vector<2x8x40xbf16>, vector<2x40x32xbf16>, vector<2x8x32xf32> -> vector<2x8x32xf32>
    "tpu.trace_stop"() : () -> ()
    %c0_13 = arith.constant 0 : index
    %c0_14 = arith.constant 0 : index
    %26 = vector.load %arg5[%c0_13, %c0_14] : memref<8x1xf32, #tpu.memory_space<vmem>>, vector<8x1xf32>
    %27 = vector.shape_cast %26 : vector<8x1xf32> to vector<1x8x1xf32>
    %28 = vector.broadcast %27 : vector<1x8x1xf32> to vector<2x8x32xf32>
    %29 = arith.addf %25, %28 : vector<2x8x32xf32>
    %cst_15 = arith.constant 0.000000e+00 : f32
    %30 = vector.broadcast %cst_15 : f32 to vector<2x8x32xf32>
    %31 = arith.maximumf %29, %30 : vector<2x8x32xf32>
    %32 = arith.truncf %31 : vector<2x8x32xf32> to vector<2x8x32xbf16>
    "tpu.trace_start"() <{level = 10 : i32, message = "bfn,bnm->bfm"}> : () -> ()
    %cst_16 = arith.constant dense<0.000000e+00> : vector<2x8x128xf32>
    %33 = tpu.matmul %32, %0, %cst_16 {dimension_numbers = #tpu.dot_dimension_numbers<[2], [1], [1], [2], [0, 0, 0, 1, 1, 2], [0], [0]>} : vector<2x8x32xbf16>, vector<2x32x128xbf16>, vector<2x8x128xf32> -> vector<2x8x128xf32>
    "tpu.trace_stop"() : () -> ()
    %34 = vector.extract_strided_slice %33 {offsets = [0, 0, 0], sizes = [2, 8, 32], strides = [1, 1, 1]} : vector<2x8x128xf32> to vector<2x8x32xf32>
    %35 = vector.extract_strided_slice %33 {offsets = [0, 0, 32], sizes = [2, 8, 32], strides = [1, 1, 1]} : vector<2x8x128xf32> to vector<2x8x32xf32>
    %36 = vector.extract_strided_slice %33 {offsets = [0, 0, 64], sizes = [2, 8, 32], strides = [1, 1, 1]} : vector<2x8x128xf32> to vector<2x8x32xf32>
    %37 = vector.extract_strided_slice %33 {offsets = [0, 0, 96], sizes = [2, 8, 32], strides = [1, 1, 1]} : vector<2x8x128xf32> to vector<2x8x32xf32>
    %38 = tpu.concatenate %31, %34, %35, %36, %37 in 1 : vector<2x8x32xf32>, vector<2x8x32xf32>, vector<2x8x32xf32>, vector<2x8x32xf32>, vector<2x8x32xf32> -> vector<2x40x32xf32>
    %39 = arith.truncf %38 : vector<2x40x32xf32> to vector<2x40x32xbf16>
    %c0_17 = arith.constant 0 : index
    %c0_18 = arith.constant 0 : index
    %40 = vector.load %arg6[%c0_17, %c0_18] : memref<8x40xbf16, #tpu.memory_space<vmem>>, vector<8x40xbf16>
    %41 = vector.shape_cast %40 : vector<8x40xbf16> to vector<1x8x40xbf16>
    %42 = vector.shape_cast %41 : vector<1x8x40xbf16> to vector<1x8x40xbf16>
    %43 = vector.broadcast %42 : vector<1x8x40xbf16> to vector<2x8x40xbf16>
    "tpu.trace_start"() <{level = 10 : i32, message = "boj,bjn->bon"}> : () -> ()
    %cst_19 = arith.constant dense<0.000000e+00> : vector<2x8x32xf32>
    %44 = tpu.matmul %43, %39, %cst_19 {dimension_numbers = #tpu.dot_dimension_numbers<[2], [1], [1], [2], [0, 0, 0, 1, 1, 2], [0], [0]>} : vector<2x8x40xbf16>, vector<2x40x32xbf16>, vector<2x8x32xf32> -> vector<2x8x32xf32>
    "tpu.trace_stop"() : () -> ()
    %c0_20 = arith.constant 0 : index
    %c0_21 = arith.constant 0 : index
    %45 = vector.load %arg7[%c0_20, %c0_21] : memref<8x1xf32, #tpu.memory_space<vmem>>, vector<8x1xf32>
    %46 = vector.shape_cast %45 : vector<8x1xf32> to vector<1x8x1xf32>
    %47 = vector.broadcast %46 : vector<1x8x1xf32> to vector<2x8x32xf32>
    %48 = arith.addf %44, %47 : vector<2x8x32xf32>
    %cst_22 = arith.constant 0.000000e+00 : f32
    %49 = vector.broadcast %cst_22 : f32 to vector<2x8x32xf32>
    %50 = arith.maximumf %48, %49 : vector<2x8x32xf32>
    %c0_23 = arith.constant 0 : index
    %c0_24 = arith.constant 0 : index
    %51 = vector.load %arg9[%c0_23, %c0_24] : memref<1x48xf32, #tpu.memory_space<vmem>>, vector<1x48xf32>
    %52 = vector.extract_strided_slice %50 {offsets = [0, 0, 0], sizes = [2, 1, 32], strides = [1, 1, 1]} : vector<2x8x32xf32> to vector<2x1x32xf32>
    %53 = vector.shape_cast %52 : vector<2x1x32xf32> to vector<2x32xf32>
    %54 = arith.truncf %53 : vector<2x32xf32> to vector<2x32xbf16>
    %c0_25 = arith.constant 0 : index
    %c0_26 = arith.constant 0 : index
    %c0_27 = arith.constant 0 : index
    %55 = vector.load %arg8[%c0_25, %c0_26, %c0_27] : memref<6x32x48xbf16, #tpu.memory_space<vmem>>, vector<1x32x48xbf16>
    %56 = vector.shape_cast %55 : vector<1x32x48xbf16> to vector<32x48xbf16>
    %cst_28 = arith.constant dense<0.000000e+00> : vector<2x48xf32>
    %57 = tpu.matmul %54, %56, %cst_28 {dimension_numbers = #tpu.dot_dimension_numbers<[1], [0], [0], [1], [0, 0, 1, 1], [], []>} : vector<2x32xbf16>, vector<32x48xbf16>, vector<2x48xf32> -> vector<2x48xf32>
    %58 = vector.broadcast %51 : vector<1x48xf32> to vector<2x48xf32>
    %59 = arith.addf %58, %57 : vector<2x48xf32>
    %60 = vector.extract_strided_slice %50 {offsets = [0, 1, 0], sizes = [2, 1, 32], strides = [1, 1, 1]} : vector<2x8x32xf32> to vector<2x1x32xf32>
    %61 = vector.shape_cast %60 : vector<2x1x32xf32> to vector<2x32xf32>
    %62 = arith.truncf %61 : vector<2x32xf32> to vector<2x32xbf16>
    %c1 = arith.constant 1 : index
    %c0_29 = arith.constant 0 : index
    %c0_30 = arith.constant 0 : index
    %63 = vector.load %arg8[%c1, %c0_29, %c0_30] : memref<6x32x48xbf16, #tpu.memory_space<vmem>>, vector<1x32x48xbf16>
    %64 = vector.shape_cast %63 : vector<1x32x48xbf16> to vector<32x48xbf16>
    %cst_31 = arith.constant dense<0.000000e+00> : vector<2x48xf32>
    %65 = tpu.matmul %62, %64, %cst_31 {dimension_numbers = #tpu.dot_dimension_numbers<[1], [0], [0], [1], [0, 0, 1, 1], [], []>} : vector<2x32xbf16>, vector<32x48xbf16>, vector<2x48xf32> -> vector<2x48xf32>
    %66 = arith.addf %59, %65 : vector<2x48xf32>
    %67 = vector.extract_strided_slice %50 {offsets = [0, 2, 0], sizes = [2, 1, 32], strides = [1, 1, 1]} : vector<2x8x32xf32> to vector<2x1x32xf32>
    %68 = vector.shape_cast %67 : vector<2x1x32xf32> to vector<2x32xf32>
    %69 = arith.truncf %68 : vector<2x32xf32> to vector<2x32xbf16>
    %c2 = arith.constant 2 : index
    %c0_32 = arith.constant 0 : index
    %c0_33 = arith.constant 0 : index
    %70 = vector.load %arg8[%c2, %c0_32, %c0_33] : memref<6x32x48xbf16, #tpu.memory_space<vmem>>, vector<1x32x48xbf16>
    %71 = vector.shape_cast %70 : vector<1x32x48xbf16> to vector<32x48xbf16>
    %cst_34 = arith.constant dense<0.000000e+00> : vector<2x48xf32>
    %72 = tpu.matmul %69, %71, %cst_34 {dimension_numbers = #tpu.dot_dimension_numbers<[1], [0], [0], [1], [0, 0, 1, 1], [], []>} : vector<2x32xbf16>, vector<32x48xbf16>, vector<2x48xf32> -> vector<2x48xf32>
    %73 = arith.addf %66, %72 : vector<2x48xf32>
    %74 = vector.extract_strided_slice %50 {offsets = [0, 3, 0], sizes = [2, 1, 32], strides = [1, 1, 1]} : vector<2x8x32xf32> to vector<2x1x32xf32>
    %75 = vector.shape_cast %74 : vector<2x1x32xf32> to vector<2x32xf32>
    %76 = arith.truncf %75 : vector<2x32xf32> to vector<2x32xbf16>
    %c3 = arith.constant 3 : index
    %c0_35 = arith.constant 0 : index
    %c0_36 = arith.constant 0 : index
    %77 = vector.load %arg8[%c3, %c0_35, %c0_36] : memref<6x32x48xbf16, #tpu.memory_space<vmem>>, vector<1x32x48xbf16>
    %78 = vector.shape_cast %77 : vector<1x32x48xbf16> to vector<32x48xbf16>
    %cst_37 = arith.constant dense<0.000000e+00> : vector<2x48xf32>
    %79 = tpu.matmul %76, %78, %cst_37 {dimension_numbers = #tpu.dot_dimension_numbers<[1], [0], [0], [1], [0, 0, 1, 1], [], []>} : vector<2x32xbf16>, vector<32x48xbf16>, vector<2x48xf32> -> vector<2x48xf32>
    %80 = arith.addf %73, %79 : vector<2x48xf32>
    %81 = vector.extract_strided_slice %50 {offsets = [0, 4, 0], sizes = [2, 1, 32], strides = [1, 1, 1]} : vector<2x8x32xf32> to vector<2x1x32xf32>
    %82 = vector.shape_cast %81 : vector<2x1x32xf32> to vector<2x32xf32>
    %83 = arith.truncf %82 : vector<2x32xf32> to vector<2x32xbf16>
    %c4 = arith.constant 4 : index
    %c0_38 = arith.constant 0 : index
    %c0_39 = arith.constant 0 : index
    %84 = vector.load %arg8[%c4, %c0_38, %c0_39] : memref<6x32x48xbf16, #tpu.memory_space<vmem>>, vector<1x32x48xbf16>
    %85 = vector.shape_cast %84 : vector<1x32x48xbf16> to vector<32x48xbf16>
    %cst_40 = arith.constant dense<0.000000e+00> : vector<2x48xf32>
    %86 = tpu.matmul %83, %85, %cst_40 {dimension_numbers = #tpu.dot_dimension_numbers<[1], [0], [0], [1], [0, 0, 1, 1], [], []>} : vector<2x32xbf16>, vector<32x48xbf16>, vector<2x48xf32> -> vector<2x48xf32>
    %87 = arith.addf %80, %86 : vector<2x48xf32>
    %88 = vector.extract_strided_slice %50 {offsets = [0, 5, 0], sizes = [2, 1, 32], strides = [1, 1, 1]} : vector<2x8x32xf32> to vector<2x1x32xf32>
    %89 = vector.shape_cast %88 : vector<2x1x32xf32> to vector<2x32xf32>
    %90 = arith.truncf %89 : vector<2x32xf32> to vector<2x32xbf16>
    %c5 = arith.constant 5 : index
    %c0_41 = arith.constant 0 : index
    %c0_42 = arith.constant 0 : index
    %91 = vector.load %arg8[%c5, %c0_41, %c0_42] : memref<6x32x48xbf16, #tpu.memory_space<vmem>>, vector<1x32x48xbf16>
    %92 = vector.shape_cast %91 : vector<1x32x48xbf16> to vector<32x48xbf16>
    %cst_43 = arith.constant dense<0.000000e+00> : vector<2x48xf32>
    %93 = tpu.matmul %90, %92, %cst_43 {dimension_numbers = #tpu.dot_dimension_numbers<[1], [0], [0], [1], [0, 0, 1, 1], [], []>} : vector<2x32xbf16>, vector<32x48xbf16>, vector<2x48xf32> -> vector<2x48xf32>
    %94 = arith.addf %87, %93 : vector<2x48xf32>
    %cst_44 = arith.constant 0.000000e+00 : f32
    %95 = vector.broadcast %cst_44 : f32 to vector<2x48xf32>
    %96 = arith.maximumf %94, %95 : vector<2x48xf32>
    %97 = arith.truncf %96 : vector<2x48xf32> to vector<2x48xbf16>
    %c0_45 = arith.constant 0 : index
    %c0_46 = arith.constant 0 : index
    %98 = vector.load %arg10[%c0_45, %c0_46] : memref<48x64xbf16, #tpu.memory_space<vmem>>, vector<48x64xbf16>
    %cst_47 = arith.constant dense<0.000000e+00> : vector<2x64xf32>
    %99 = tpu.matmul %97, %98, %cst_47 {dimension_numbers = #tpu.dot_dimension_numbers<[1], [0], [0], [1], [0, 0, 1, 1], [], []>} : vector<2x48xbf16>, vector<48x64xbf16>, vector<2x64xf32> -> vector<2x64xf32>
    %c0_48 = arith.constant 0 : index
    %c0_49 = arith.constant 0 : index
    %100 = vector.load %arg11[%c0_48, %c0_49] : memref<1x64xf32, #tpu.memory_space<vmem>>, vector<1x64xf32>
    %101 = vector.broadcast %100 : vector<1x64xf32> to vector<2x64xf32>
    %102 = arith.addf %99, %101 : vector<2x64xf32>
    %cst_50 = arith.constant 0.000000e+00 : f32
    %103 = vector.broadcast %cst_50 : f32 to vector<2x64xf32>
    %104 = arith.maximumf %102, %103 : vector<2x64xf32>
    %105 = arith.truncf %104 : vector<2x64xf32> to vector<2x64xbf16>
    %c0_51 = arith.constant 0 : index
    %c0_52 = arith.constant 0 : index
    %106 = vector.load %arg12[%c0_51, %c0_52] : memref<64x4xbf16, #tpu.memory_space<vmem>>, vector<64x4xbf16>
    %cst_53 = arith.constant dense<0.000000e+00> : vector<2x4xf32>
    %107 = tpu.matmul %105, %106, %cst_53 {dimension_numbers = #tpu.dot_dimension_numbers<[1], [0], [0], [1], [0, 0, 1, 1], [], []>} : vector<2x64xbf16>, vector<64x4xbf16>, vector<2x4xf32> -> vector<2x4xf32>
    %c0_54 = arith.constant 0 : index
    %c0_55 = arith.constant 0 : index
    %108 = vector.load %arg13[%c0_54, %c0_55] : memref<1x4xf32, #tpu.memory_space<vmem>>, vector<1x4xf32>
    %109 = vector.broadcast %108 : vector<1x4xf32> to vector<2x4xf32>
    %110 = arith.addf %107, %109 : vector<2x4xf32>
    %cst_56 = arith.constant dense<0xFF800000> : vector<2xf32>
    %111 = vector.multi_reduction <maximumf>, %110, %cst_56 [1] : vector<2x4xf32> to vector<2xf32>
    %112 = vector.shape_cast %111 : vector<2xf32> to vector<2x1xf32>
    %113 = vector.broadcast %112 : vector<2x1xf32> to vector<2x4xf32>
    %114 = arith.subf %110, %113 : vector<2x4xf32>
    %115 = math.exp %114 : vector<2x4xf32>
    %cst_57 = arith.constant dense<0.000000e+00> : vector<2xf32>
    %116 = vector.multi_reduction <add>, %115, %cst_57 [1] : vector<2x4xf32> to vector<2xf32>
    %117 = vector.shape_cast %116 : vector<2xf32> to vector<2x1xf32>
    %118 = math.log %117 : vector<2x1xf32>
    %119 = vector.broadcast %118 : vector<2x1xf32> to vector<2x4xf32>
    %120 = arith.subf %114, %119 : vector<2x4xf32>
    %c0_58 = arith.constant 0 : index
    %c0_59 = arith.constant 0 : index
    %121 = vector.load %arg14[%c0_58, %c0_59] : memref<2x4xf32, #tpu.memory_space<vmem>>, vector<2x4xf32>
    tpu.vector_store %arg14[%c0_58, %c0_59], %120 {strides = array<i32>} : memref<2x4xf32, #tpu.memory_space<vmem>>, vector<2x4xf32>,
    return
  }
}

</mosaic_0001>

<bundles_post_ra>
// kernel: gcn_forward.1
= control target key start
LH: loop header
LB: loop body
LE: loop exit
PB: predicated region body
PF: predicated region fallthrough
CT: control target
= control target key end

     0   :  { %19 = vsyncpa [#allocation3], 0  ;;  %s2086_s0 = inlined_call_operand.vmem [shape: f32[2,1,32], index: 0, kind: input, shape index: {}]   ;;  %s2087_s1 = inlined_call_operand.hbm [shape: bf16[2,32,128], index: 1, kind: input, shape index: {}]   ;;  %s2088_s2 = inlined_call_operand.vmem [shape: f32[8,1], index: 2, kind: input, shape index: {}]   ;;  %s2089_s3 = inlined_call_operand.vmem [shape: f32[8,1], index: 3, kind: input, shape index: {}]   ;;  %s2090_s4 = inlined_call_operand.vmem [shape: bf16[8,40], index: 4, kind: input, shape index: {}]   ;;  %s2091_s5 = inlined_call_operand.vmem [shape: f32[8,1], index: 5, kind: input, shape index: {}]   ;;  %s2092_s6 = inlined_call_operand.hbm [shape: bf16[8,40], index: 6, kind: input, shape index: {}]   ;;  %s2093_s7 = inlined_call_operand.vmem [shape: f32[8,1], index: 7, kind: input, shape index: {}]   ;;  %s2094_s8 = inlined_call_operand.vmem [shape: bf16[6,32,48], index: 8, kind: input, shape index: {}]   ;;  %s2095_s9 = inlined_call_operand.hbm [shape: f32[1,48], index: 9, kind: input, shape index: {}]   ;;  %s2096_s10 = inlined_call_operand.hbm [shape: bf16[48,64], index: 10, kind: input, shape index: {}]   ;;  %s2097_s11 = inlined_call_operand.hbm [shape: f32[1,64], index: 11, kind: input, shape index: {}]   ;;  %s2098_s12 = inlined_call_operand.vmem [shape: bf16[64,4], index: 12, kind: input, shape index: {}]   ;;  %s2099_s13 = inlined_call_operand.hbm [shape: f32[1,4], index: 13, kind: input, shape index: {}]   ;;  %s2100_s14 = inlined_call_operand.hbm [shape: f32[2,4], index: 14, kind: output, shape index: {}]  }
   0x1   :  { %20 = vsyncpa [#allocation6], 0 }
   0x2   :  { %21 = vsyncpa [#allocation9], 0 }
   0x3   :  { %22 = vsyncpa [#allocation12], 0 }
   0x4   :  { %23 = vsyncpa [#allocation4], 0  ;;  %s1718_s29 = smov [#allocation5]   ;;  %s1554_s17 = scalar_lea.hbm %s2092_s6, 64 }
   0x5   :  { %s52_s30 = sshll.u32 %s1718_s29, 4  ;;  %p1555_p0 = scmp.ne.s32.totalorder %s2092_s6, %s1554_s17  ;;  %s53_s30 = int_to_ptr.vmem [resolvable:$true] %s52_s30 }
   0x6   :  { %p1558_p1 = scmp.lt.u32.totalorder %s1554_s17, %s2092_s6 }
   0x8   :  { %p1560_p2 = pnand %p1558_p1, %p1555_p0 }
   0xa   :  { %1563 = shalt.err (!%p1560_p2)
}
   0xb   :  { %s1564_s22 = scalar_lea.vmem %s53_s30, 64  ;;  %p1569_p4 = scmp.lt.s32.totalorder %s53_s30, %s53_s30 }
   0xc   :  { %p1565_p3 = scmp.ne.s32.totalorder %s53_s30, %s1564_s22  ;;  %p1570_p5 = scmp.lt.s32.totalorder %s1564_s22, %s1564_s22 }
   0xe   :  { %p1571_p6 = por %p1570_p5, %p1569_p4 }
  0x10   :  { %p1572_p7 = pnand %p1571_p6, %p1565_p3 }
  0x12   :  { %1575 = shalt.err (!%p1572_p7)
}
  0x13   :  { %55 = dma.hbm_to_vmem [thread:$0]  %s2092_s6, 64, %s53_s30, [#allocation6]  }
  0x14   :  { %s1719_s25 = smov [#allocation8]   ;;  %s1720_s27 = smov [#allocation2]  }
  0x15   :  { %s75_s26 = sshll.u32 %s1719_s25, 4  ;;  %s31_s28 = sshll.u32 %s1720_s27, 4  ;;  %s76_s26 = int_to_ptr.vmem [resolvable:$true] %s75_s26  ;;  %s32_s28 = int_to_ptr.vmem [resolvable:$true] %s31_s28 }
  0x16   :  { %s1576_s16 = scalar_lea.hbm %s2096_s10, 384 }
  0x17   :  { %p1577_p8 = scmp.ne.s32.totalorder %s2096_s10, %s1576_s16  ;;  %p1580_p9 = scmp.lt.u32.totalorder %s1576_s16, %s2096_s10 }
  0x19   :  { %p1582_p10 = pnand %p1580_p9, %p1577_p8 }
  0x1b   :  { %1585 = shalt.err (!%p1582_p10)
}
  0x1c   :  { %s1586_s6 = scalar_lea.vmem %s76_s26, 384  ;;  %p1591_p12 = scmp.lt.s32.totalorder %s76_s26, %s76_s26 }
  0x1d   :  { %p1587_p11 = scmp.ne.s32.totalorder %s76_s26, %s1586_s6  ;;  %p1592_p13 = scmp.lt.s32.totalorder %s1586_s6, %s1586_s6 }
  0x1f   :  { %p1593_p0 = por %p1592_p13, %p1591_p12 }
  0x21   :  { %p1594_p1 = pnand %p1593_p0, %p1587_p11 }
  0x23   :  { %1597 = shalt.err (!%p1594_p1)
}
  0x24   :  { %s1721_s30 = smov 64   ;;  %s1722_s21 = smov 4  }
  0x25   :  { %81 = dma.hbm_to_vmem [thread:$0]  %s2096_s10, 384, %s76_s26, [#allocation9], %s1721_s30, %s1721_s30, %s1722_s21  }
  0x26   :  { %s1598_s27 = scalar_lea.hbm %s2087_s1, 512 }
  0x27   :  { %p1599_p2 = scmp.ne.s32.totalorder %s2087_s1, %s1598_s27  ;;  %p1602_p3 = scmp.lt.u32.totalorder %s1598_s27, %s2087_s1 }
  0x29   :  { %p1604_p4 = pnand %p1602_p3, %p1599_p2 }
  0x2b   :  { %1607 = shalt.err (!%p1604_p4)
}
  0x2c   :  { %s1608_s18 = scalar_lea.vmem %s32_s28, 512  ;;  %p1613_p6 = scmp.lt.s32.totalorder %s32_s28, %s32_s28 }
  0x2d   :  { %p1609_p5 = scmp.ne.s32.totalorder %s32_s28, %s1608_s18  ;;  %p1614_p7 = scmp.lt.s32.totalorder %s1608_s18, %s1608_s18 }
  0x2f   :  { %p1615_p8 = por %p1614_p7, %p1613_p6 }
  0x31   :  { %p1616_p9 = pnand %p1615_p8, %p1609_p5 }
  0x33   :  { %1619 = shalt.err (!%p1616_p9)
}
  0x34   :  { %37 = dma.hbm_to_vmem [thread:$0]  %s2087_s1, 512, %s32_s28, [#allocation3], %s1721_s30, %s1721_s30, %s1722_s21  }
  0x35   :  { %s1723_s19 = smov [#allocation7]   ;;  %s1724_s6 = smov [#allocation10]  }
  0x36   :  { %s66_s20 = sshll.u32 %s1723_s19, 4  ;;  %s88_s22 = sshll.u32 %s1724_s6, 4  ;;  %s67_s20 = int_to_ptr.vmem [resolvable:$true] %s66_s20  ;;  %s89_s22 = int_to_ptr.vmem [resolvable:$true] %s88_s22 }
  0x37   :  { %s1620_s25 = scalar_lea.hbm %s2095_s9, 16 }
  0x38   :  { %p1621_p10 = scmp.ne.s32.totalorder %s2095_s9, %s1620_s25  ;;  %p1624_p11 = scmp.lt.u32.totalorder %s1620_s25, %s2095_s9 }
  0x3a   :  { %p1626_p12 = pnand %p1624_p11, %p1621_p10 }
  0x3c   :  { %1629 = shalt.err (!%p1626_p12)
}
  0x3d   :  { %s1630_s1 = scalar_lea.vmem %s67_s20, 16  ;;  %s1634_s28 = scalar_lea.vmem %s67_s20, 32 }
  0x3e   :  { %p1631_p13 = scmp.ne.s32.totalorder %s67_s20, %s1630_s1  ;;  %p1635_p0 = scmp.lt.s32.totalorder %s67_s20, %s67_s20 }
  0x3f   :  { %p1636_p1 = scmp.lt.s32.totalorder %s1634_s28, %s1630_s1 }
  0x41   :  { %p1637_p2 = por %p1636_p1, %p1635_p0 }
  0x43   :  { %p1638_p3 = pnand %p1637_p2, %p1631_p13 }
  0x45   :  { %1641 = shalt.err (!%p1638_p3)
}
  0x46   :  { %69 = dma.hbm_to_vmem [thread:$0]  %s2095_s9, 16, %s67_s20, [#allocation6]  }
  0x47   :  { %s1642_s26 = scalar_lea.hbm %s2097_s11, 16 }
  0x48   :  { %p1643_p4 = scmp.ne.s32.totalorder %s2097_s11, %s1642_s26  ;;  %p1646_p5 = scmp.lt.u32.totalorder %s1642_s26, %s2097_s11 }
  0x4a   :  { %p1648_p6 = pnand %p1646_p5, %p1643_p4 }
  0x4c   :  { %1651 = shalt.err (!%p1648_p6)
}
  0x4d   :  { %s1652_s25 = scalar_lea.vmem %s89_s22, 16  ;;  %s1656_s27 = scalar_lea.vmem %s89_s22, 32 }
  0x4e   :  { %p1653_p7 = scmp.ne.s32.totalorder %s89_s22, %s1652_s25  ;;  %p1657_p8 = scmp.lt.s32.totalorder %s89_s22, %s89_s22 }
  0x4f   :  { %p1658_p9 = scmp.lt.s32.totalorder %s1656_s27, %s1652_s25 }
  0x51   :  { %p1659_p10 = por %p1658_p9, %p1657_p8 }
  0x53   :  { %p1660_p11 = pnand %p1659_p10, %p1653_p7 }
  0x55   :  { %1663 = shalt.err (!%p1660_p11)
}
  0x56   :  { %91 = dma.hbm_to_vmem [thread:$0]  %s2097_s11, 16, %s89_s22, [#allocation9]  }
  0x57   :  { %s1725_s29 = smov [#allocation11]   ;;  %s1664_s28 = scalar_lea.hbm %s2099_s13, 16 }
  0x58   :  { %s100_s15 = sshll.u32 %s1725_s29, 4  ;;  %p1665_p12 = scmp.ne.s32.totalorder %s2099_s13, %s1664_s28  ;;  %s101_s15 = int_to_ptr.vmem [resolvable:$true] %s100_s15 }
  0x59   :  { %p1668_p13 = scmp.lt.u32.totalorder %s1664_s28, %s2099_s13 }
  0x5b   :  { %p1670_p0 = pnand %p1668_p13, %p1665_p12 }
  0x5d   :  { %1673 = shalt.err (!%p1670_p0)
}
  0x5e   :  { %s1674_s26 = scalar_lea.vmem %s101_s15, 16  ;;  %s1678_s11 = scalar_lea.vmem %s101_s15, 32 }
  0x5f   :  { %p1675_p1 = scmp.ne.s32.totalorder %s101_s15, %s1674_s26  ;;  %p1679_p2 = scmp.lt.s32.totalorder %s101_s15, %s101_s15 }
  0x60   :  { %p1680_p3 = scmp.lt.s32.totalorder %s1678_s11, %s1674_s26 }
  0x62   :  { %p1681_p4 = por %p1680_p3, %p1679_p2 }
  0x64   :  { %p1682_p5 = pnand %p1681_p4, %p1675_p1 }
  0x66   :  { %1685 = shalt.err (!%p1682_p5)
}
  0x67   :  { %103 = dma.hbm_to_vmem [thread:$0]  %s2099_s13, 16, %s101_s15, [#allocation12]  }
  0x68   :  { %1708 = dma.done.wait [#allocation3], 512  }
  0x69   :  { %1709 = vsyncadd [#allocation3], 4294966784 }
  0x6a   :  { %1710 = dma.done.wait [#allocation6], 80  }
  0x6b   :  { %1711 = vsyncadd [#allocation6], 4294967216 }
  0x6c   :  { %1712 = dma.done.wait [#allocation9], 400  }
  0x6d   :  { %1713 = vsyncadd [#allocation9], 4294966896 }
  0x6e   :  { %1714 = dma.done.wait [#allocation12], 16  }
  0x6f   :  { %1715 = vsyncadd [#allocation12], 4294967280  ;;  %v1726_v0 = vmov 0   ;;  %v131_v1 = vld [vmem:[%s2088_s2] sm:$0xff]  ;;  %v1727_v4 = vmov 0.0   ;;  %v1895_v5 = vld [vmem:[#allocation2 + $0x8] sm:$0xff]  }
  0x70   :  { %1505 = vset.pattern.permute.xlu0 %v1726_v0  ;;  %1526 = vset.pattern.permute.xlu1 %v1726_v0  ;;  %v153_v2 = vld [vmem:[%s2089_s3] sm:$0xff]  ;;  %vm1728_vm0 = vmmov 0   ;;  %vm177_vm1 = vcmask 261120   ;;  %v1909_v14 = vld [vmem:[#allocation2 + $0x10] sm:$0xff]   ;;  %v1913_v17 = vld [vmem:[#allocation2 + $0x18] sm:$0xff]   ;;  %s1730_s29 = smov 96  }
  0x71   :  { %136 = vperm.xlu0 %1505, %v131_v1   ;;  %v1889_v3 = vld [vmem:[#allocation2] sm:$0xff]   ;;  %1328 = vmatprep.subr.bf16.mxu1 %v1727_v4  ;;  %vm313_vm2 = vcmask 1043456   ;;  %vm309_vm3 = vcmask 326656   ;;  %vm626_vm4 = vcmask 1041409   ;;  %vm1048_vm5 = vcmask 392192  }
  0x72   :  { %1344 = vmatprep.subr.bf16.mxu0 %v1727_v4  ;;  %1329 = vmatpush3.bf16.msra.mxu1 %v1889_v3  ;;  %v1209_v6 = vld [vmem:[%s2086_s0] ss:$0 sm:$0xff]  ;;  %v1210_v9 = vld [vmem:[%s2086_s0 + $0x1] ss:$0 sm:$0xff]  ;;  %s1729_s0 = smov 32   ;;  %vm1133_vm6 = vcmask 523264  }
  0x73   :  { %1330 = vmatprep.subr.bf16.mxu1 %v1727_v4  ;;  %1332 = vmatprep.mubr.msk.bf16.mxu1 %vm1728_vm0, %v1727_v4  ;;  %v303_v30 = vld [vmem:[%s2091_s5] sm:$0xff]  ;;  %vm1177_vm7 = vcmask 25600  }
  0x74   :  { %1350 = vmatprep.mubr.msk.bf16.mxu0 %vm1728_vm0, %v1727_v4  ;;  %v302_v46 = vld [vmem:[%s2090_s4] sm:$0xf] }
  0x75   :  { %156 = vperm.xlu0 %1505, %v153_v2  }
  0x76   :  { %1331 = vmatpush3.bf16.msra.mxu1 %v1895_v5 }
  0x77   :  { %1336 = vmatprep.subr.bf16.mxu1 %v1727_v4 }
  0xf0   :  { %v137_v7 = vpop.permute.xlu0 %136 }
  0xf1   :  { %v151_v8 = vmul.f32 %v1209_v6, %v137_v7  ;;  %v152_v12 = vmul.f32 %v1210_v9, %v137_v7 }
  0xf4   :  { %v157_v10 = vpop.permute.xlu0 %156 }
  0xf5   :  { %v159_v11 = vadd.f32 %v157_v10, %v151_v8  ;;  %v160_v15 = vadd.f32 %v157_v10, %v152_v12  ;;  %v517_v10 = vld [vmem:[%s2093_s7] sm:$0xff] }
  0xf7   :  { %v161_v13 = vmax.f32 %v159_v11, 0.0  ;;  %v162_v18 = vmax.f32 %v160_v15, 0.0 }
  0xf9   :  { %v163_v16 = vpack.c.bf16 %v161_v13, %v161_v13  ;;  %v164_v19 = vpack.c.bf16 %v162_v18, %v162_v18 }
  0xfb   :  { %1333 = vmatmul.mubr.msk.bf16.vlgmr.msra.gmra.mrb[0].mxu1 %vm177_vm1, %v163_v16 }
  0xfc   :  { %1337 = vmatpush3.bf16.msra.mxu1 %v1909_v14  ;;  %1340 = vmatprep.mubr.msk.bf16.mxu1 %vm1728_vm0, %v1727_v4 }
  0xfd   :  { %1338 = vmatprep.subr.bf16.mxu1 %v1727_v4 }
 0x100   :  { %1339 = vmatpush3.bf16.msra.mxu1 %v1913_v17 }
 0x101   :  { %1354 = vmatprep.subr.bf16.mxu1 %v1727_v4 }
 0x103   :  { %1341 = vmatmul.mubr.msk.bf16.vlgmr.msra.gmra.mrb[4].mxu1 %vm177_vm1, %v164_v19 }
 0x104   :  { %1360 = vmatprep.mubr.msk.bf16.mxu1 %vm1728_vm0, %v1727_v4 }
 0x1ce   :  { %v215_v20 = vpop.f32.mrb[0].mxu1 }
 0x1cf   :  { %v1334_v21 = vpop.f32.mrb[1].mxu1  ;;  %v296_v22 = vpack.c.bf16 %v215_v20, %v161_v13 }
 0x1d0   :  { %v218_v23 = vpop.f32.mrb[2].mxu1 }
 0x1d1   :  { %v1335_v24 = vpop.f32.mrb[3].mxu1  ;;  %1345 = vmatpush3.bf16.msra.mxu0 %v296_v22 }
 0x1d2   :  { %1346 = vmatprep.subr.bf16.mxu0 %v1727_v4 }
 0x1d6   :  { %v270_v25 = vpop.f32.mrb[4].mxu1 }
 0x1d7   :  { %v299_v26 = vpack.c.bf16 %v270_v25, %v162_v18  ;;  %292 = vrot.lane.b32.xlu0 %v270_v25, %s1729_s0  ;;  %v1342_v27 = vpop.f32.mrb[5].mxu1  ;;  %v1506_v28 = vpack.i.bf16 %v215_v20, %v270_v25  ;;  %v516_v25 = vld [vmem:[#allocation5] sm:$0xf] }
 0x1d8   :  { %v273_v29 = vpop.f32.mrb[6].mxu1  ;;  %v1532_v27 = vld [vmem:[%s2094_s8 + $0x8] sm:$0xff]  }
 0x1d9   :  { %1507 = vrot.lane.b32.xlu1 %v1506_v28, %s1730_s29  ;;  %v1343_v31 = vpop.f32.mrb[7].mxu1  ;;  %1355 = vmatpush3.bf16.msra.mxu1 %v299_v26  ;;  %v1531_v26 = vld [vmem:[%s2094_s8] sm:$0xff]  }
 0x1da   :  { %1356 = vmatprep.subr.bf16.mxu1 %v1727_v4 }
 0x1db   :  { %306 = vperm.xlu0 %1505, %v303_v30  }
 0x1dd   :  { %1512 = vrot.lane.b32.xlu1 %v1506_v28, %s1721_s30  ;;  %v1543_v28 = vld [vmem:[#allocation8] sm:$0xff]  }
 0x1e1   :  { %290 = vrot.lane.b32.xlu1 %v215_v20, %s1729_s0 }
 0x249   :  { %v293_v34 = vpop.permute.xlu0 %292 }
 0x24a   :  { %v301_v41 = vpack.c.bf16 %v293_v34, %v293_v34 }
 0x24b   :  { %v1508_v32 = vpop.permute.xlu1 %1507 }
 0x24c   :  { %v1510_v35 = vunpack.i.h.bf16 %v1508_v32  ;;  %v1509_v36 = vunpack.i.l.bf16 %v1508_v32  ;;  %v358_v45 = vsel %vm313_vm2, %v301_v41, 0 }
 0x24f   :  { %v1513_v33 = vpop.permute.xlu1 %1512 }
 0x250   :  { %v1515_v37 = vunpack.i.h.bf16 %v1513_v33  ;;  %v1514_v38 = vunpack.i.l.bf16 %v1513_v33 }
 0x252   :  { %v297_v39 = vpack.c.bf16 %v1515_v37, %v1510_v35  ;;  %v300_v40 = vpack.c.bf16 %v1514_v38, %v1509_v36 }
 0x253   :  { %v291_v42 = vpop.permute.xlu1 %290 }
 0x254   :  { %v298_v43 = vpack.c.bf16 %v291_v42, %v291_v42  ;;  %1347 = vmatpush3.bf16.msra.mxu0 %v297_v39  ;;  %1357 = vmatpush3.bf16.msra.mxu1 %v300_v40 }
 0x255   :  { %1348 = vmatprep.subr.bf16.mxu0 %v1727_v4  ;;  %1358 = vmatprep.subr.bf16.mxu1 %v1727_v4 }
 0x256   :  { %v315_v44 = vsel %vm313_vm2, %v298_v43, 0 }
 0x258   :  { %1349 = vmatpush3.bf16.msra.mxu0 %v315_v44  ;;  %1359 = vmatpush3.bf16.msra.mxu1 %v358_v45 }
 0x259   :  { %1364 = vmatprep.subr.bf16.mxu0 %v1727_v4  ;;  %1372 = vmatprep.subr.bf16.mxu1 %v1727_v4 }
 0x25a   :  { %v307_v47 = vpop.permute.xlu0 %306 }
 0x25b   :  { %1351 = vmatmul.mubr.msk.bf16.vlgmr.msra.gmra.mrb[0].mxu0 %vm309_vm3, %v302_v46  ;;  %1361 = vmatmul.mubr.msk.bf16.vlgmr.msra.gmra.mrb[8].mxu1 %vm309_vm3, %v302_v46 }
 0x25c   :  { %1365 = vmatpush3.bf16.msra.mxu0 %v1889_v3  ;;  %1373 = vmatpush3.bf16.msra.mxu1 %v1909_v14 }
 0x25d   :  { %1366 = vmatprep.subr.bf16.mxu0 %v1727_v4  ;;  %1374 = vmatprep.subr.bf16.mxu1 %v1727_v4 }
 0x25e   :  { %1368 = vmatprep.mubr.msk.bf16.mxu0 %vm1728_vm0, %v1727_v4  ;;  %1376 = vmatprep.mubr.msk.bf16.mxu1 %vm1728_vm0, %v1727_v4 }
 0x260   :  { %1367 = vmatpush3.bf16.msra.mxu0 %v1895_v5  ;;  %1375 = vmatpush3.bf16.msra.mxu1 %v1913_v17 }
 0x261   :  { %1380 = vmatprep.subr.bf16.mxu0 %v1727_v4  ;;  %1390 = vmatprep.subr.bf16.mxu1 %v1727_v4 }
 0x32e   :  { %v351_v48 = vpop.f32.mrb[0].mxu0  ;;  %v394_v49 = vpop.f32.mrb[8].mxu1 }
 0x32f   :  { %v352_v50 = vadd.f32 %v351_v48, %v307_v47  ;;  %v395_v51 = vadd.f32 %v394_v49, %v307_v47  ;;  %v1352_v52 = vpop.f32.mrb[1].mxu0  ;;  %v1362_v53 = vpop.f32.mrb[9].mxu1 }
 0x330   :  { %v354_v54 = vpop.f32.mrb[2].mxu0  ;;  %v397_v55 = vpop.f32.mrb[10].mxu1 }
 0x331   :  { %v400_v56 = vmax.f32 %v352_v50, 0.0  ;;  %v401_v57 = vmax.f32 %v395_v51, 0.0  ;;  %v1353_v58 = vpop.f32.mrb[3].mxu0  ;;  %v1363_v59 = vpop.f32.mrb[11].mxu1  ;;  %v1533_v55 = vld [vmem:[%s2094_s8 + $0x10] sm:$0xff]  }
 0x333   :  { %v402_v60 = vpack.c.bf16 %v400_v56, %v400_v56  ;;  %v403_v61 = vpack.c.bf16 %v401_v57, %v401_v57 }
 0x335   :  { %1369 = vmatmul.mubr.msk.bf16.vlgmr.msra.gmra.mrb[4].mxu0 %vm177_vm1, %v402_v60  ;;  %1377 = vmatmul.mubr.msk.bf16.vlgmr.msra.gmra.mrb[12].mxu1 %vm177_vm1, %v403_v61 }
 0x336   :  { %1386 = vmatprep.mubr.msk.bf16.mxu0 %vm1728_vm0, %v1727_v4  ;;  %1396 = vmatprep.mubr.msk.bf16.mxu1 %vm1728_vm0, %v1727_v4 }
 0x408   :  { %v441_v62 = vpop.f32.mrb[4].mxu0  ;;  %v484_v63 = vpop.f32.mrb[12].mxu1 }
 0x409   :  { %v510_v0 = vpack.c.bf16 %v441_v62, %v400_v56  ;;  %v513_v1 = vpack.c.bf16 %v484_v63, %v401_v57  ;;  %v1370_v2 = vpop.f32.mrb[5].mxu0  ;;  %v1378_v3 = vpop.f32.mrb[13].mxu1  ;;  %v1521_v5 = vpack.i.bf16 %v441_v62, %v484_v63 }
 0x40a   :  { %v444_v6 = vpop.f32.mrb[6].mxu0  ;;  %v487_v7 = vpop.f32.mrb[14].mxu1  ;;  %v1536_v3 = vld [vmem:[%s2094_s8 + $0x28] sm:$0xff]  }
 0x40b   :  { %v1371_v8 = vpop.f32.mrb[7].mxu0  ;;  %1381 = vmatpush3.bf16.msra.mxu0 %v510_v0  ;;  %1522 = vrot.lane.b32.xlu0 %v1521_v5, %s1721_s30  ;;  %v1379_v9 = vpop.f32.mrb[15].mxu1  ;;  %v1538_v7 = vld [vmem:[%s2094_s8 + $0x38] sm:$0xff]  }
 0x40c   :  { %1517 = vrot.lane.b32.xlu1 %v1521_v5, %s1730_s29  ;;  %1391 = vmatpush3.bf16.msra.mxu1 %v513_v1  ;;  %v1535_v1 = vld [vmem:[%s2094_s8 + $0x20] sm:$0xff]   ;;  %v1537_v5 = vld [vmem:[%s2094_s8 + $0x30] sm:$0xff]  }
 0x40d   :  { %1382 = vmatprep.subr.bf16.mxu0 %v1727_v4  ;;  %1392 = vmatprep.subr.bf16.mxu1 %v1727_v4  ;;  %v1539_v8 = vld [vmem:[%s2094_s8 + $0x40] sm:$0xff]  }
 0x40f   :  { %504 = vrot.lane.b32.xlu0 %v441_v62, %s1729_s0 }
 0x410   :  { %506 = vrot.lane.b32.xlu1 %v484_v63, %s1729_s0  ;;  %v1534_v63 = vld [vmem:[%s2094_s8 + $0x18] sm:$0xff]  }
 0x414   :  { %520 = vperm.xlu1 %1526, %v517_v10   ;;  %v1540_v10 = vld [vmem:[%s2094_s8 + $0x48] sm:$0xff]  }
 0x47d   :  { %v1523_v11 = vpop.permute.xlu0 %1522 }
 0x47e   :  { %v1525_v12 = vunpack.i.h.bf16 %v1523_v11  ;;  %v1524_v13 = vunpack.i.l.bf16 %v1523_v11  ;;  %v1518_v14 = vpop.permute.xlu1 %1517  ;;  %v1541_v11 = vld [vmem:[%s2094_s8 + $0x50] sm:$0xff]  }
 0x47f   :  { %v1520_v15 = vunpack.i.h.bf16 %v1518_v14  ;;  %v1519_v16 = vunpack.i.l.bf16 %v1518_v14 }
 0x481   :  { %v511_v17 = vpack.c.bf16 %v1525_v12, %v1520_v15  ;;  %v514_v18 = vpack.c.bf16 %v1524_v13, %v1519_v16  ;;  %v505_v19 = vpop.permute.xlu0 %504  ;;  %v1542_v13 = vld [vmem:[%s2094_s8 + $0x58] sm:$0xff]   ;;  %v1544_v15 = vld [vmem:[#allocation8 + $0x8] sm:$0xff]  }
 0x482   :  { %v512_v20 = vpack.c.bf16 %v505_v19, %v505_v19  ;;  %v507_v21 = vpop.permute.xlu1 %506  ;;  %v1545_v16 = vld [vmem:[#allocation8 + $0x10] sm:$0xff]  }
 0x483   :  { %v515_v22 = vpack.c.bf16 %v507_v21, %v507_v21  ;;  %1383 = vmatpush3.bf16.msra.mxu0 %v511_v17  ;;  %1393 = vmatpush3.bf16.msra.mxu1 %v514_v18  ;;  %v1226_v17 = vld [vmem:[#allocation7] ss:$0 sm:$0xff] }
 0x484   :  { %v527_v23 = vsel %vm313_vm2, %v512_v20, 0  ;;  %1384 = vmatprep.subr.bf16.mxu0 %v1727_v4  ;;  %1394 = vmatprep.subr.bf16.mxu1 %v1727_v4 }
 0x485   :  { %v570_v24 = vsel %vm313_vm2, %v515_v22, 0 }
 0x487   :  { %1385 = vmatpush3.bf16.msra.mxu0 %v527_v23  ;;  %1395 = vmatpush3.bf16.msra.mxu1 %v570_v24  ;;  %v1546_v24 = vld [vmem:[%s2098_s12] sm:$0xff]  }
 0x488   :  { %1400 = vmatprep.subr.bf16.mxu0 %v1727_v4  ;;  %1448 = vmatprep.subr.bf16.mxu1 %v1727_v4 }
 0x48a   :  { %1387 = vmatmul.mubr.msk.bf16.vlgmr.msra.gmra.mrb[8].mxu0 %vm309_vm3, %v516_v25  ;;  %1397 = vmatmul.mubr.msk.bf16.vlgmr.msra.gmra.mrb[16].mxu1 %vm309_vm3, %v516_v25 }
 0x48b   :  { %1404 = vmatprep.mubr.msk.bf16.mxu0 %vm1728_vm0, %v1727_v4  ;;  %1454 = vmatprep.mubr.msk.bf16.mxu1 %vm1728_vm0, %v1727_v4 }
 0x48c   :  { %1401 = vmatpush3.bf16.msra.mxu0 %v1531_v26  ;;  %1449 = vmatpush3.bf16.msra.mxu1 %v1543_v28  ;;  %v1547_v26 = vld [vmem:[%s2098_s12 + $0x8] sm:$0xff]   ;;  %v1549_v28 = vld [vmem:[%s2098_s12 + $0x18] sm:$0xff]  }
 0x48d   :  { %1402 = vmatprep.subr.bf16.mxu0 %v1727_v4  ;;  %1450 = vmatprep.subr.bf16.mxu1 %v1727_v4 }
 0x490   :  { %1403 = vmatpush3.bf16.msra.mxu0 %v1532_v27  ;;  %1451 = vmatpush3.bf16.msra.mxu1 %v1544_v15  ;;  %v1548_v27 = vld [vmem:[%s2098_s12 + $0x10] sm:$0xff]   ;;  %s1731_s12 = smov [#allocation13]  }
 0x491   :  { %1408 = vmatprep.subr.bf16.mxu0 %v1727_v4  ;;  %1452 = vmatprep.subr.bf16.mxu1 %v1727_v4  ;;  %s1197_s28 = sshll.u32 %s1731_s12, 4  ;;  %s1198_s28 = int_to_ptr.vmem [resolvable:$true] %s1197_s28 }
 0x492   :  { %s1686_s21 = scalar_lea.vmem %s1198_s28, 32  ;;  %p1691_p7 = scmp.lt.s32.totalorder %s1198_s28, %s1198_s28 }
 0x493   :  { %v521_v29 = vpop.permute.xlu1 %520  ;;  %p1687_p6 = scmp.ne.s32.totalorder %s1198_s28, %s1686_s21  ;;  %p1692_p8 = scmp.lt.s32.totalorder %s1686_s21, %s1686_s21 }
 0x494   :  { %1453 = vmatpush3.bf16.msra.mxu1 %v1545_v16 }
 0x495   :  { %1458 = vmatprep.subr.bf16.mxu1 %v1727_v4  ;;  %p1693_p9 = por %p1692_p8, %p1691_p7 }
 0x497   :  { %p1694_p10 = pnand %p1693_p9, %p1687_p6 }
 0x55d   :  { %v563_v30 = vpop.f32.mrb[8].mxu0  ;;  %v606_v31 = vpop.f32.mrb[16].mxu1 }
 0x55e   :  { %v564_v32 = vadd.f32 %v563_v30, %v521_v29  ;;  %v607_v33 = vadd.f32 %v606_v31, %v521_v29  ;;  %v1388_v34 = vpop.f32.mrb[9].mxu0  ;;  %v1398_v35 = vpop.f32.mrb[17].mxu1  ;;  %v1262_v29 = vld [vmem:[#allocation10] ss:$0 sm:$0xff] }
 0x55f   :  { %v566_v36 = vpop.f32.mrb[10].mxu0  ;;  %v609_v37 = vpop.f32.mrb[18].mxu1 }
 0x560   :  { %v612_v38 = vmax.f32 %v564_v32, 0.0  ;;  %v613_v39 = vmax.f32 %v607_v33, 0.0  ;;  %v1389_v40 = vpop.f32.mrb[11].mxu0  ;;  %v1399_v41 = vpop.f32.mrb[19].mxu1  ;;  %v1267_v37 = vld [vmem:[#allocation11] ss:$0 sm:$0xff] }
 0x562   :  { %v615_v42 = vpack.c.bf16 %v612_v38, %v612_v38  ;;  %v616_v43 = vpack.c.bf16 %v613_v39, %v613_v39 }
 0x564   :  { %v623_v44 = vunpack.c.l.b16 %v615_v42  ;;  %v624_v45 = vunpack.c.l.b16 %v616_v43 }
 0x566   :  { %v625_v46 = vrot.slane %v624_v45, 7  ;;  %v696_v47 = vrot.slane %v623_v44, 1  ;;  %v760_v48 = vrot.slane %v623_v44, 2  ;;  %v761_v49 = vrot.slane %v624_v45, 1 }
 0x567   :  { %v825_v50 = vrot.slane %v623_v44, 3  ;;  %v826_v51 = vrot.slane %v624_v45, 2  ;;  %v890_v52 = vrot.slane %v623_v44, 4  ;;  %v891_v53 = vrot.slane %v624_v45, 3 }
 0x568   :  { %v627_v54 = vsel %vm626_vm4, %v625_v46, %v623_v44  ;;  %v697_v56 = vsel %vm626_vm4, %v624_v45, %v696_v47  ;;  %v762_v57 = vsel %vm626_vm4, %v761_v49, %v760_v48  ;;  %v955_v58 = vrot.slane %v623_v44, 5 }
 0x569   :  { %v628_v59 = vpack.c.b16 %v627_v54, %v627_v54  ;;  %v827_v60 = vsel %vm626_vm4, %v826_v51, %v825_v50  ;;  %v892_v61 = vsel %vm626_vm4, %v891_v53, %v890_v52  ;;  %v956_v62 = vrot.slane %v624_v45, 4 }
 0x56a   :  { %v698_v2 = vpack.c.b16 %v697_v56, %v697_v56  ;;  %v763_v6 = vpack.c.b16 %v762_v57, %v762_v57  ;;  %v828_v9 = vpack.c.b16 %v827_v60, %v827_v60  ;;  %v893_v12 = vpack.c.b16 %v892_v61, %v892_v61 }
 0x56b   :  { %1405 = vmatmul.mubr.msk.bf16.vlgmr.msra.gmra.mrb[12].mxu0 %vm177_vm1, %v628_v59  ;;  %v957_v0 = vsel %vm626_vm4, %v956_v62, %v955_v58 }
 0x56c   :  { %1409 = vmatpush3.bf16.msra.mxu0 %v1533_v55  ;;  %1412 = vmatprep.mubr.msk.bf16.mxu0 %vm1728_vm0, %v1727_v4  ;;  %v958_v14 = vpack.c.b16 %v957_v0, %v957_v0 }
 0x56d   :  { %1410 = vmatprep.subr.bf16.mxu0 %v1727_v4 }
 0x570   :  { %1411 = vmatpush3.bf16.msra.mxu0 %v1534_v63 }
 0x571   :  { %1416 = vmatprep.subr.bf16.mxu0 %v1727_v4 }
 0x577   :  { %1413 = vmatmul.mubr.msk.bf16.vlgmr.msra.gmra.mrb[12].mxu0 %vm177_vm1, %v698_v2 }
 0x578   :  { %1417 = vmatpush3.bf16.msra.mxu0 %v1535_v1  ;;  %1420 = vmatprep.mubr.msk.bf16.mxu0 %vm1728_vm0, %v1727_v4 }
 0x579   :  { %1418 = vmatprep.subr.bf16.mxu0 %v1727_v4 }
 0x57c   :  { %1419 = vmatpush3.bf16.msra.mxu0 %v1536_v3 }
 0x57d   :  { %1424 = vmatprep.subr.bf16.mxu0 %v1727_v4 }
 0x583   :  { %1421 = vmatmul.mubr.msk.bf16.vlgmr.msra.gmra.mrb[12].mxu0 %vm177_vm1, %v763_v6 }
 0x584   :  { %1425 = vmatpush3.bf16.msra.mxu0 %v1537_v5  ;;  %1428 = vmatprep.mubr.msk.bf16.mxu0 %vm1728_vm0, %v1727_v4 }
 0x585   :  { %1426 = vmatprep.subr.bf16.mxu0 %v1727_v4 }
 0x588   :  { %1427 = vmatpush3.bf16.msra.mxu0 %v1538_v7 }
 0x589   :  { %1432 = vmatprep.subr.bf16.mxu0 %v1727_v4 }
 0x58f   :  { %1429 = vmatmul.mubr.msk.bf16.vlgmr.msra.gmra.mrb[12].mxu0 %vm177_vm1, %v828_v9 }
 0x590   :  { %1433 = vmatpush3.bf16.msra.mxu0 %v1539_v8  ;;  %1436 = vmatprep.mubr.msk.bf16.mxu0 %vm1728_vm0, %v1727_v4 }
 0x591   :  { %1434 = vmatprep.subr.bf16.mxu0 %v1727_v4 }
 0x594   :  { %1435 = vmatpush3.bf16.msra.mxu0 %v1540_v10 }
 0x595   :  { %1440 = vmatprep.subr.bf16.mxu0 %v1727_v4 }
 0x59b   :  { %1437 = vmatmul.mubr.msk.bf16.vlgmr.msra.gmra.mrb[12].mxu0 %vm177_vm1, %v893_v12 }
 0x59c   :  { %1441 = vmatpush3.bf16.msra.mxu0 %v1541_v11  ;;  %1444 = vmatprep.mubr.msk.bf16.mxu0 %vm1728_vm0, %v1727_v4 }
 0x59d   :  { %1442 = vmatprep.subr.bf16.mxu0 %v1727_v4 }
 0x5a0   :  { %1443 = vmatpush3.bf16.msra.mxu0 %v1542_v13 }
 0x5a7   :  { %1445 = vmatmul.mubr.msk.bf16.vlgmr.msra.gmra.mrb[12].mxu0 %vm177_vm1, %v958_v14 }
 0x67a   :  { %v1008_v18 = vpop.f32.mrb[12].mxu0 }
 0x67b   :  { %v1470_v19 = vadd.f32 %v1226_v17, %v1008_v18  ;;  %v1446_v20 = vpop.f32.mrb[13].mxu0 }
 0x67c   :  { %v1011_v21 = vpop.f32.mrb[14].mxu0 }
 0x67d   :  { %v1015_v22 = vmax.f32 %v1470_v19, 0.0  ;;  %v1447_v23 = vpop.f32.mrb[15].mxu0 }
 0x67f   :  { %v1016_v25 = vpack.c.bf16 %v1015_v22, %v1015_v22 }
 0x681   :  { %1455 = vmatmul.mubr.msk.bf16.vlgmr.msra.gmra.mrb[20].mxu1 %vm1048_vm5, %v1016_v25 }
 0x682   :  { %1459 = vmatpush3.bf16.msra.mxu1 %v1546_v24  ;;  %1466 = vmatprep.mubr.msk.bf16.mxu1 %vm1728_vm0, %v1727_v4 }
 0x683   :  { %1460 = vmatprep.subr.bf16.mxu1 %v1727_v4 }
 0x686   :  { %1461 = vmatpush3.bf16.msra.mxu1 %v1547_v26 }
 0x687   :  { %1462 = vmatprep.subr.bf16.mxu1 %v1727_v4 }
 0x68a   :  { %1463 = vmatpush3.bf16.msra.mxu1 %v1548_v27 }
 0x68b   :  { %1464 = vmatprep.subr.bf16.mxu1 %v1727_v4 }
 0x68e   :  { %1465 = vmatpush3.bf16.msra.mxu1 %v1549_v28 }
 0x754   :  { %v1086_v30 = vpop.f32.mrb[20].mxu1 }
 0x755   :  { %v1087_v31 = vadd.f32 %v1262_v29, %v1086_v30  ;;  %v1456_v32 = vpop.f32.mrb[21].mxu1 }
 0x756   :  { %v1089_v33 = vpop.f32.mrb[22].mxu1 }
 0x757   :  { %v1092_v34 = vmax.f32 %v1087_v31, 0.0  ;;  %v1457_v35 = vpop.f32.mrb[23].mxu1 }
 0x759   :  { %v1093_v36 = vpack.c.bf16 %v1092_v34, %v1092_v34 }
 0x75b   :  { %1467 = vmatmul.mubr.msk.bf16.vlgmr.msra.gmra.mrb[24].mxu1 %vm1133_vm6, %v1093_v36 }
 0x82e   :  { %v1171_v38 = vpop.f32.mrb[24].mxu1 }
 0x82f   :  { %v1172_v39 = vadd.f32 %v1267_v37, %v1171_v38  ;;  %v1468_v4 = vpop.f32.mrb[25].mxu1 }
 0x830   :  { %v1174_v40 = vpop.f32.mrb[26].mxu1 }
 0x831   :  { %v1469_v41 = vpop.f32.mrb[27].mxu1  ;;  %v1178_v42 = vsel %vm1177_vm7, %v1172_v39, -inf }
 0x832   :  { %1179 = vmax.xlane.f32.xlu0 %v1178_v42 }
 0x8bf   :  { %v1180_v43 = vpop.xlane.xlu0 %1179 }
 0x8c0   :  { %v1181_v44 = vsub.f32 %v1172_v39, %v1180_v43 }
 0x8c2   :  { %v1182_v45 = vmul.f32 1.442695, %v1181_v44 }
 0x8c4   :  { %1550 = vpow2.f32 %v1182_v45 }
 0x8ce   :  { %v1551_v46 = vpop.eup %1550 }
 0x8cf   :  { %v1184_v47 = vsel %vm1177_vm7, %v1551_v46, 0.0 }
 0x8d0   :  { %1185 = vadd.xlane.f32.xlu1 %v1184_v47 }
 0x95d   :  { %v1186_v48 = vpop.xlane.xlu1 %1185 }
 0x95e   :  { %1552 = vlog2.f32 %v1186_v48 }
 0x968   :  { %v1553_v49 = vpop.eup %1552 }
 0x969   :  { %v1188_v50 = vmul.f32 0.6931472, %v1553_v49 }
 0x96b   :  { %v1189_v51 = vsub.f32 %v1181_v44, %v1188_v50 }
 0x96d   :  { %1190 = vst.msk [vmem:[#allocation13] sm:$0x3] %vm1177_vm7, %v1189_v51 }
 0x96e   :  { %1697 = shalt.err (!%p1694_p10)
}
 0x96f   :  { %s1698_s10 = scalar_lea.hbm %s2100_s14, 32 }
 0x970   :  { %p1699_p11 = scmp.ne.s32.totalorder %s2100_s14, %s1698_s10  ;;  %p1702_p12 = scmp.lt.u32.totalorder %s1698_s10, %s2100_s14 }
 0x972   :  { %p1704_p13 = pnand %p1702_p12, %p1699_p11 }
 0x974   :  { %1707 = shalt.err (!%p1704_p13)
}
 0x975   :  { %1200 = dma.vmem_to_hbm [thread:$0]  %s1198_s28, 32, %s2100_s14, [#allocation4]  }
 0x976   :  { %1716 = dma.done.wait [#allocation4], 32  }
 0x977   :  { %1717 = vsyncadd [#allocation4], 4294967264 }
 0x978   :  { %1204 = vsyncpa [#allocation3], 1 }
 0x979   :  { %1205 = vsyncpa [#allocation6], 1 }
 0x97a   :  { %1206 = vsyncpa [#allocation9], 1 }
 0x97b   :  { %1207 = vsyncpa [#allocation12], 1 }
 0x97c   :  { %1208 = vsyncpa [#allocation4], 1 }

</bundles_post_ra>
